<compile_context>
chip_gen: v6e
topology: v6e:2x2x1
jax: 0.10.0
libtpu: 0.0.40
codegen_flags: <defaults>
</compile_context>

<pallas_src>
import functools
import math

import jax
import jax.numpy as jnp
from jax import lax
from jax.experimental import pallas as pl
from jax.experimental.pallas import tpu as pltpu


# ----------------------------- fused kernel ----------------------------------

def _gnn_fused_kernel(e_ref, adj_ref, ops_ref, *refs, stage_counts):
    """Entire GNN forward (eval mode) for the whole batch in one grid step.

    refs = [w_0, b_0, ..., w_{S-1}, b_{S-1},        # BN-folded Linear stages
            wms, bms, wfc_pad, bfc, mu_mask,        # head parameters
            new_ops_ref, new_adj_ref, musig_ref]    # outputs
    Every stage is relu(x @ W' + b') with the eval-mode BatchNorm already
    folded into (W', b') at parameter-preparation time.
    """
    n_stage_refs = 2 * sum(stage_counts)
    stage_refs = refs[:n_stage_refs]
    wms_ref, bms_ref, wfc_ref, bfc_ref, mask_ref = \
        refs[n_stage_refs:n_stage_refs + 5]
    ops_out_ref, adj_out_ref, musig_ref = refs[n_stage_refs + 5:]

    B, N, _ = adj_ref.shape
    adj = adj_ref[...]                       # (B, N, N)
    x = ops_ref[...]                         # (B, N, Din)

    # ---- encoder: GIN recursions, intermediates stay in VMEM / vregs ----
    si = 0
    for r, n_stages in enumerate(stage_counts):
        # GIN aggregation: (1 + e_r) * x + A @ x   (batched matmul)
        agg = jnp.einsum('bij,bjd->bid', adj, x,
                         preferred_element_type=jnp.float32)
        x = (1.0 + e_ref[r]) * x + agg
        # MLP (+ folded BN + ReLU) on the flattened (B*N, D) tile: one matmul
        # per stage instead of B tiny per-batch matmuls.
        flat = x.reshape(B * N, x.shape[-1])
        for _ in range(n_stages):
            w_ref, b_ref = stage_refs[si], stage_refs[si + 1]
            si += 2
            flat = jnp.maximum(
                jnp.dot(flat, w_ref[...], preferred_element_type=jnp.float32)
                + b_ref[...], 0.0)
        x = flat.reshape(B, N, flat.shape[-1])

    # ---- head: mu|sigma projection + decoder (fc / dim-0 softmax / gram) ----
    flat = x.reshape(B * N, x.shape[-1])
    # mu|sigma in a single lane-dense (H, 2*Dout) matmul
    ms = (jnp.dot(flat, wms_ref[...], preferred_element_type=jnp.float32)
          + bms_ref[...])
    musig_ref[...] = ms.reshape(B, N, ms.shape[-1])

    # decoder fc on mu (sigma rows of wfc_pad are zero) + softmax over dim 0
    logits = (jnp.dot(ms, wfc_ref[...], preferred_element_type=jnp.float32)
              + bfc_ref[...]).reshape(B, N, -1)
    mx = jnp.max(logits, axis=0, keepdims=True)
    ex = jnp.exp(logits - mx)
    ops_out_ref[...] = ex / jnp.sum(ex, axis=0, keepdims=True)

    # new_adj = sigmoid(mu @ mu^T); sigma columns are masked to zero first
    mu = (ms * mask_ref[...]).reshape(B, N, ms.shape[-1])
    gram = jnp.einsum('bnd,bmd->bnm', mu, mu,
                      preferred_element_type=jnp.float32)
    adj_out_ref[...] = jax.nn.sigmoid(gram)


def _vmem_limit_bytes(arrays, out_bytes):
    """Size-aware scoped-VMEM cap: 2x (double buffering) + headroom, floored
    at the 16 MiB v5e default and kept well below v7x's 64 MiB physical VMEM."""
    n = sum(int(a.size) * a.dtype.itemsize for a in arrays) + out_bytes
    return int(min(max(2 * n + (4 << 20), 16 << 20), 48 << 20))


def gnn_forward(prep, ops, adj):
    """Fully fused Pallas forward: one pallas_call for recursions + head."""
    B, N, Din = ops.shape
    stage_params = [sp for rec in prep["stages"] for sp in rec]
    stage_counts = tuple(len(rec) for rec in prep["stages"])
    wms, bms, wfc_pad, bfc, mu_mask = prep["head"]
    two_d = wms.shape[1]

    inputs = [prep["e"], adj, ops]
    in_specs = [
        pl.BlockSpec(memory_space=pltpu.MemorySpace.SMEM),      # e (scalars)
        pl.BlockSpec((B, N, N), lambda i: (0, 0, 0)),           # adj
        pl.BlockSpec((B, N, Din), lambda i: (0, 0, 0)),         # ops
    ]
    for (w, b) in stage_params:
        inputs += [w, b]
        in_specs += [pl.BlockSpec(w.shape, lambda i: (0, 0)),
                     pl.BlockSpec(b.shape, lambda i: (0, 0))]
    for arr in (wms, bms, wfc_pad, bfc, mu_mask):
        inputs.append(arr)
        in_specs.append(pl.BlockSpec(arr.shape, lambda i: (0, 0)))

    out_shape = (
        jax.ShapeDtypeStruct((B, N, Din), jnp.float32),     # new_ops
        jax.ShapeDtypeStruct((B, N, N), jnp.float32),       # new_adj
        jax.ShapeDtypeStruct((B, N, two_d), jnp.float32),   # [mu | sigma]
    )
    out_specs = (
        pl.BlockSpec((B, N, Din), lambda i: (0, 0, 0)),
        pl.BlockSpec((B, N, N), lambda i: (0, 0, 0)),
        pl.BlockSpec((B, N, two_d), lambda i: (0, 0, 0)),
    )
    out_bytes = 4 * B * N * (Din + N + two_d)
    vmem_limit = _vmem_limit_bytes(inputs, out_bytes)

    new_ops, new_adj, musig = pl.pallas_call(
        functools.partial(_gnn_fused_kernel, stage_counts=stage_counts),
        out_shape=out_shape,
        grid=(1,),
        in_specs=in_specs,
        out_specs=out_specs,
        compiler_params=pltpu.CompilerParams(
            dimension_semantics=("arbitrary",),
            vmem_limit_bytes=vmem_limit),
    )(*inputs)

    d = two_d // 2
    mu = musig[..., :d]
    sigma = musig[..., d:]
    # eval mode: dropout identity, no reparameterization noise -> mu_ == mu
    return new_ops, new_adj, mu, sigma


# ----------------------------- parameters ------------------------------------

def bn_fold(gamma, beta, mean, var, eps=1e-5):
    # eval-mode BatchNorm folded into a per-channel affine (scale, shift)
    scale = gamma / jnp.sqrt(var + eps)
    shift = beta - mean * scale
    return scale[None, :].astype(jnp.float32), shift[None, :].astype(jnp.float32)


def fold_bn_into_linear(w, b, scale, shift):
    # bn(x @ W + b) == x @ (W * scale) + (b * scale + shift)
    return w * scale, b * scale + shift


def init_linear(key, in_dim, out_dim):
    # nn.Linear default init; weight stored transposed as (in, out)
    k1, k2 = jax.random.split(key)
    bound = 1.0 / math.sqrt(in_dim)
    w = jax.random.uniform(k1, (in_dim, out_dim), jnp.float32, -bound, bound)
    b = jax.random.uniform(k2, (1, out_dim), jnp.float32, -bound, bound)
    return w, b


def init_bn(dim):
    # default BatchNorm1d init (gamma=1, beta=0, running_mean=0, running_var=1)
    return bn_fold(jnp.ones(dim), jnp.zeros(dim), jnp.zeros(dim), jnp.ones(dim))


def init_params(key, input_dim, hidden_dim, output_dim, num_rec, num_layers):
    keys = iter(jax.random.split(key, 64))
    params = {"e": jnp.zeros((num_rec - 1,), jnp.float32), "mlps": [], "bnorm": []}
    for i in range(num_rec - 1):
        in_dim = input_dim if i == 0 else hidden_dim
        if num_layers == 1:
            lins = [init_linear(next(keys), in_dim, hidden_dim)]
            bns = []
        else:
            lins = [init_linear(next(keys), in_dim, hidden_dim)]
            for _ in range(num_layers - 2):
                lins.append(init_linear(next(keys), hidden_dim, hidden_dim))
            lins.append(init_linear(next(keys), hidden_dim, hidden_dim))
            bns = [init_bn(hidden_dim) for _ in range(num_layers - 1)]
        params["mlps"].append({"lin": lins, "bn": bns})
        params["bnorm"].append(init_bn(hidden_dim))
    params["mu"] = init_linear(next(keys), hidden_dim, output_dim)
    params["sigma"] = init_linear(next(keys), hidden_dim, output_dim)
    params["dec_fc"] = init_linear(next(keys), output_dim, input_dim)
    return params


def prepare_params(params):
    """One-time prep: fold eval-mode BatchNorm into the Linear weights and
    build the concatenated head parameters (outside the per-call forward)."""
    num_rec = params["e"].shape[0] + 1
    stages = []
    for i in range(num_rec - 1):
        mlp = params["mlps"][i]
        rec = []
        n_lin = len(mlp["lin"])
        for l in range(n_lin - 1):            # inner MLP stages: Linear+BN+ReLU
            w, b = mlp["lin"][l]
            s, t = mlp["bn"][l]
            rec.append(fold_bn_into_linear(w, b, s, t))
        w, b = mlp["lin"][-1]                 # final Linear + GNN outer BN + ReLU
        s, t = params["bnorm"][i]
        rec.append(fold_bn_into_linear(w, b, s, t))
        stages.append(rec)

    wmu, bmu = params["mu"]
    wsg, bsg = params["sigma"]
    wfc, bfc = params["dec_fc"]
    d = wmu.shape[1]
    wms = jnp.concatenate([wmu, wsg], axis=1)                        # (H, 2D)
    bms = jnp.concatenate([bmu, bsg], axis=1)                        # (1, 2D)
    wfc_pad = jnp.concatenate(
        [wfc, jnp.zeros((d, wfc.shape[1]), jnp.float32)], axis=0)    # (2D, Din)
    mu_mask = jnp.concatenate(
        [jnp.ones((1, d), jnp.float32), jnp.zeros((1, d), jnp.float32)], axis=1)
    return {"e": params["e"], "stages": stages,
            "head": (wms, bms, wfc_pad, bfc, mu_mask)}


# ------------------------- pure-JAX reference ---------------------------------

def gnn_forward_ref(params, ops, adj):
    B, N, _ = ops.shape
    num_rec = params["e"].shape[0] + 1
    hi = lax.Precision.HIGHEST

    ops_ = ops
    for i in range(num_rec - 1):
        a = jnp.einsum('bij,bjd->bid', adj, ops_, precision=hi)
        x = ((1.0 + params["e"][i]) * ops_ + a).reshape(B * N, -1)
        mlp = params["mlps"][i]
        n_lin = len(mlp["lin"])
        for l in range(n_lin - 1):
            w, b = mlp["lin"][l]
            s, t = mlp["bn"][l]
            x = jnp.maximum((jnp.dot(x, w, precision=hi) + b) * s + t, 0.0)
        w, b = mlp["lin"][-1]
        s, t = params["bnorm"][i]
        x = jnp.maximum((jnp.dot(x, w, precision=hi) + b) * s + t, 0.0)
        ops_ = x.reshape(B, N, -1)

    flat = ops_.reshape(B * N, -1)
    mu = (jnp.dot(flat, params["mu"][0], precision=hi)
          + params["mu"][1]).reshape(B, N, -1)
    sigma = (jnp.dot(flat, params["sigma"][0], precision=hi)
             + params["sigma"][1]).reshape(B, N, -1)
    mu_ = mu
    wfc, bfc = params["dec_fc"]
    logits = jnp.einsum('bnd,df->bnf', mu_, wfc, precision=hi) + bfc
    new_ops = jax.nn.softmax(logits, axis=0)
    new_adj = jax.nn.sigmoid(jnp.einsum('bnd,bmd->bnm', mu_, mu_, precision=hi))
    return new_ops, new_adj, mu_, sigma


# --------------------------------- main ----------------------------------------

if __name__ == "__main__":
    B, N = 2, 8
    input_dim, hidden_dim, output_dim = 16, 32, 16
    num_rec, num_layers = 3, 2

    key = jax.random.PRNGKey(0)
    kp, ko, ka = jax.random.split(key, 3)
    params = init_params(kp, input_dim, hidden_dim, output_dim, num_rec, num_layers)
    prep = prepare_params(params)       # one-time: BN folding + head concatenation

    ops = jax.random.normal(ko, (B, N, input_dim), jnp.float32)
    adj = (jax.random.uniform(ka, (B, N, N)) > 0.5).astype(jnp.float32)

    out = jax.block_until_ready(jax.jit(gnn_forward)(prep, ops, adj))
    ref = jax.block_until_ready(jax.jit(gnn_forward_ref)(params, ops, adj))

    names = ("new_ops", "new_adj", "mu_", "sigma")
    for name, o, r in zip(names, out, ref):
        assert o.shape == r.shape and o.dtype == r.dtype, (name, o.shape, o.dtype)
        err = float(jnp.max(jnp.abs(o - r)))
        assert err < 2e-2, (name, err)

    print("KERNEL_OK")
</pallas_src>

<mosaic_0001>
module attributes {stable_mosaic.version = 11 : i64} {
  func.func @_gnn_fused_kernel(%arg0: i32, %arg1: memref<2xf32, #tpu.memory_space<smem>>, %arg2: memref<2x8x8xf32, #tpu.memory_space<vmem>>, %arg3: memref<2x8x16xf32, #tpu.memory_space<vmem>>, %arg4: memref<16x32xf32, #tpu.memory_space<vmem>>, %arg5: memref<1x32xf32, #tpu.memory_space<vmem>>, %arg6: memref<32x32xf32, #tpu.memory_space<vmem>>, %arg7: memref<1x32xf32, #tpu.memory_space<vmem>>, %arg8: memref<32x32xf32, #tpu.memory_space<vmem>>, %arg9: memref<1x32xf32, #tpu.memory_space<vmem>>, %arg10: memref<32x32xf32, #tpu.memory_space<vmem>>, %arg11: memref<1x32xf32, #tpu.memory_space<vmem>>, %arg12: memref<32x32xf32, #tpu.memory_space<vmem>>, %arg13: memref<1x32xf32, #tpu.memory_space<vmem>>, %arg14: memref<32x16xf32, #tpu.memory_space<vmem>>, %arg15: memref<1x16xf32, #tpu.memory_space<vmem>>, %arg16: memref<1x32xf32, #tpu.memory_space<vmem>>, %arg17: memref<2x8x16xf32, #tpu.memory_space<vmem>>, %arg18: memref<2x8x8xf32, #tpu.memory_space<vmem>>, %arg19: memref<2x8x32xf32, #tpu.memory_space<vmem>>) attributes {dimension_semantics = [#tpu.dimension_semantics<arbitrary>], iteration_bounds = array<i64: 1>, scalar_prefetch = 0 : i64, scratch_operands = 0 : i64, tpu.core_type = #tpu.core_type<tc>, window_params = [{transform_indices = @transform_0, window_bounds = array<i64: 2>}, {pipeline_mode = #tpu.pipeline_mode<synchronous>, transform_indices = @transform_1, window_bounds = array<i64: 2, 8, 8>}, {pipeline_mode = #tpu.pipeline_mode<synchronous>, transform_indices = @transform_2, window_bounds = array<i64: 2, 8, 16>}, {pipeline_mode = #tpu.pipeline_mode<synchronous>, transform_indices = @transform_3, window_bounds = array<i64: 16, 32>}, {pipeline_mode = #tpu.pipeline_mode<synchronous>, transform_indices = @transform_4, window_bounds = array<i64: 1, 32>}, {pipeline_mode = #tpu.pipeline_mode<synchronous>, transform_indices = @transform_5, window_bounds = array<i64: 32, 32>}, {pipeline_mode = #tpu.pipeline_mode<synchronous>, transform_indices = @transform_6, window_bounds = array<i64: 1, 32>}, {pipeline_mode = #tpu.pipeline_mode<synchronous>, transform_indices = @transform_7, window_bounds = array<i64: 32, 32>}, {pipeline_mode = #tpu.pipeline_mode<synchronous>, transform_indices = @transform_8, window_bounds = array<i64: 1, 32>}, {pipeline_mode = #tpu.pipeline_mode<synchronous>, transform_indices = @transform_9, window_bounds = array<i64: 32, 32>}, {pipeline_mode = #tpu.pipeline_mode<synchronous>, transform_indices = @transform_10, window_bounds = array<i64: 1, 32>}, {pipeline_mode = #tpu.pipeline_mode<synchronous>, transform_indices = @transform_11, window_bounds = array<i64: 32, 32>}, {pipeline_mode = #tpu.pipeline_mode<synchronous>, transform_indices = @transform_12, window_bounds = array<i64: 1, 32>}, {pipeline_mode = #tpu.pipeline_mode<synchronous>, transform_indices = @transform_13, window_bounds = array<i64: 32, 16>}, {pipeline_mode = #tpu.pipeline_mode<synchronous>, transform_indices = @transform_14, window_bounds = array<i64: 1, 16>}, {pipeline_mode = #tpu.pipeline_mode<synchronous>, transform_indices = @transform_15, window_bounds = array<i64: 1, 32>}, {pipeline_mode = #tpu.pipeline_mode<synchronous>, transform_indices = @transform_16, window_bounds = array<i64: 2, 8, 16>}, {pipeline_mode = #tpu.pipeline_mode<synchronous>, transform_indices = @transform_17, window_bounds = array<i64: 2, 8, 8>}, {pipeline_mode = #tpu.pipeline_mode<synchronous>, transform_indices = @transform_18, window_bounds = array<i64: 2, 8, 32>}]} {
    %c0 = arith.constant 0 : index
    %c0_0 = arith.constant 0 : index
    %c0_1 = arith.constant 0 : index
    %0 = vector.load %arg2[%c0, %c0_0, %c0_1] : memref<2x8x8xf32, #tpu.memory_space<vmem>>, vector<2x8x8xf32>
    %c0_2 = arith.constant 0 : index
    %c0_3 = arith.constant 0 : index
    %c0_4 = arith.constant 0 : index
    %1 = vector.load %arg3[%c0_2, %c0_3, %c0_4] : memref<2x8x16xf32, #tpu.memory_space<vmem>>, vector<2x8x16xf32>
    "tpu.trace_start"() <{level = 10 : i32, message = "bij,bjd->bid"}> : () -> ()
    %cst = arith.constant dense<0.000000e+00> : vector<2x8x16xf32>
    %2 = tpu.matmul %0, %1, %cst {dimension_numbers = #tpu.dot_dimension_numbers<[2], [1], [1], [2], [0, 0, 0, 1, 1, 2], [0], [0]>} : vector<2x8x8xf32>, vector<2x8x16xf32>, vector<2x8x16xf32> -> vector<2x8x16xf32>
    "tpu.trace_stop"() : () -> ()
    %c0_5 = arith.constant 0 : index
    %3 = memref.load %arg1[%c0_5] : memref<2xf32, #tpu.memory_space<smem>>
    %cst_6 = arith.constant 1.000000e+00 : f32
    %4 = arith.addf %cst_6, %3 : f32
    %5 = vector.broadcast %4 : f32 to vector<2x8x16xf32>
    %6 = arith.mulf %5, %1 : vector<2x8x16xf32>
    %7 = arith.addf %6, %2 : vector<2x8x16xf32>
    %8 = vector.shape_cast %7 : vector<2x8x16xf32> to vector<16x16xf32>
    %c0_7 = arith.constant 0 : index
    %c0_8 = arith.constant 0 : index
    %9 = vector.load %arg4[%c0_7, %c0_8] : memref<16x32xf32, #tpu.memory_space<vmem>>, vector<16x32xf32>
    %cst_9 = arith.constant dense<0.000000e+00> : vector<16x32xf32>
    %10 = tpu.matmul %8, %9, %cst_9 {dimension_numbers = #tpu.dot_dimension_numbers<[1], [0], [0], [1], [0, 0, 1, 1], [], []>} : vector<16x16xf32>, vector<16x32xf32>, vector<16x32xf32> -> vector<16x32xf32>
    %c0_10 = arith.constant 0 : index
    %c0_11 = arith.constant 0 : index
    %11 = vector.load %arg5[%c0_10, %c0_11] : memref<1x32xf32, #tpu.memory_space<vmem>>, vector<1x32xf32>
    %12 = vector.broadcast %11 : vector<1x32xf32> to vector<16x32xf32>
    %13 = arith.addf %10, %12 : vector<16x32xf32>
    %cst_12 = arith.constant 0.000000e+00 : f32
    %14 = vector.broadcast %cst_12 : f32 to vector<16x32xf32>
    %15 = arith.maximumf %13, %14 : vector<16x32xf32>
    %c0_13 = arith.constant 0 : index
    %c0_14 = arith.constant 0 : index
    %16 = vector.load %arg6[%c0_13, %c0_14] : memref<32x32xf32, #tpu.memory_space<vmem>>, vector<32x32xf32>
    %cst_15 = arith.constant dense<0.000000e+00> : vector<16x32xf32>
    %17 = tpu.matmul %15, %16, %cst_15 {dimension_numbers = #tpu.dot_dimension_numbers<[1], [0], [0], [1], [0, 0, 1, 1], [], []>} : vector<16x32xf32>, vector<32x32xf32>, vector<16x32xf32> -> vector<16x32xf32>
    %c0_16 = arith.constant 0 : index
    %c0_17 = arith.constant 0 : index
    %18 = vector.load %arg7[%c0_16, %c0_17] : memref<1x32xf32, #tpu.memory_space<vmem>>, vector<1x32xf32>
    %19 = vector.broadcast %18 : vector<1x32xf32> to vector<16x32xf32>
    %20 = arith.addf %17, %19 : vector<16x32xf32>
    %cst_18 = arith.constant 0.000000e+00 : f32
    %21 = vector.broadcast %cst_18 : f32 to vector<16x32xf32>
    %22 = arith.maximumf %20, %21 : vector<16x32xf32>
    %23 = vector.shape_cast %22 : vector<16x32xf32> to vector<2x8x32xf32>
    "tpu.trace_start"() <{level = 10 : i32, message = "bij,bjd->bid"}> : () -> ()
    %cst_19 = arith.constant dense<0.000000e+00> : vector<2x8x32xf32>
    %24 = tpu.matmul %0, %23, %cst_19 {dimension_numbers = #tpu.dot_dimension_numbers<[2], [1], [1], [2], [0, 0, 0, 1, 1, 2], [0], [0]>} : vector<2x8x8xf32>, vector<2x8x32xf32>, vector<2x8x32xf32> -> vector<2x8x32xf32>
    "tpu.trace_stop"() : () -> ()
    %c1 = arith.constant 1 : index
    %25 = memref.load %arg1[%c1] : memref<2xf32, #tpu.memory_space<smem>>
    %cst_20 = arith.constant 1.000000e+00 : f32
    %26 = arith.addf %cst_20, %25 : f32
    %27 = vector.broadcast %26 : f32 to vector<2x8x32xf32>
    %28 = arith.mulf %27, %23 : vector<2x8x32xf32>
    %29 = arith.addf %28, %24 : vector<2x8x32xf32>
    %30 = vector.shape_cast %29 : vector<2x8x32xf32> to vector<16x32xf32>
    %c0_21 = arith.constant 0 : index
    %c0_22 = arith.constant 0 : index
    %31 = vector.load %arg8[%c0_21, %c0_22] : memref<32x32xf32, #tpu.memory_space<vmem>>, vector<32x32xf32>
    %cst_23 = arith.constant dense<0.000000e+00> : vector<16x32xf32>
    %32 = tpu.matmul %30, %31, %cst_23 {dimension_numbers = #tpu.dot_dimension_numbers<[1], [0], [0], [1], [0, 0, 1, 1], [], []>} : vector<16x32xf32>, vector<32x32xf32>, vector<16x32xf32> -> vector<16x32xf32>
    %c0_24 = arith.constant 0 : index
    %c0_25 = arith.constant 0 : index
    %33 = vector.load %arg9[%c0_24, %c0_25] : memref<1x32xf32, #tpu.memory_space<vmem>>, vector<1x32xf32>
    %34 = vector.broadcast %33 : vector<1x32xf32> to vector<16x32xf32>
    %35 = arith.addf %32, %34 : vector<16x32xf32>
    %cst_26 = arith.constant 0.000000e+00 : f32
    %36 = vector.broadcast %cst_26 : f32 to vector<16x32xf32>
    %37 = arith.maximumf %35, %36 : vector<16x32xf32>
    %c0_27 = arith.constant 0 : index
    %c0_28 = arith.constant 0 : index
    %38 = vector.load %arg10[%c0_27, %c0_28] : memref<32x32xf32, #tpu.memory_space<vmem>>, vector<32x32xf32>
    %cst_29 = arith.constant dense<0.000000e+00> : vector<16x32xf32>
    %39 = tpu.matmul %37, %38, %cst_29 {dimension_numbers = #tpu.dot_dimension_numbers<[1], [0], [0], [1], [0, 0, 1, 1], [], []>} : vector<16x32xf32>, vector<32x32xf32>, vector<16x32xf32> -> vector<16x32xf32>
    %c0_30 = arith.constant 0 : index
    %c0_31 = arith.constant 0 : index
    %40 = vector.load %arg11[%c0_30, %c0_31] : memref<1x32xf32, #tpu.memory_space<vmem>>, vector<1x32xf32>
    %41 = vector.broadcast %40 : vector<1x32xf32> to vector<16x32xf32>
    %42 = arith.addf %39, %41 : vector<16x32xf32>
    %cst_32 = arith.constant 0.000000e+00 : f32
    %43 = vector.broadcast %cst_32 : f32 to vector<16x32xf32>
    %44 = arith.maximumf %42, %43 : vector<16x32xf32>
    %45 = vector.shape_cast %44 : vector<16x32xf32> to vector<2x8x32xf32>
    %46 = vector.shape_cast %45 : vector<2x8x32xf32> to vector<16x32xf32>
    %c0_33 = arith.constant 0 : index
    %c0_34 = arith.constant 0 : index
    %47 = vector.load %arg12[%c0_33, %c0_34] : memref<32x32xf32, #tpu.memory_space<vmem>>, vector<32x32xf32>
    %cst_35 = arith.constant dense<0.000000e+00> : vector<16x32xf32>
    %48 = tpu.matmul %46, %47, %cst_35 {dimension_numbers = #tpu.dot_dimension_numbers<[1], [0], [0], [1], [0, 0, 1, 1], [], []>} : vector<16x32xf32>, vector<32x32xf32>, vector<16x32xf32> -> vector<16x32xf32>
    %c0_36 = arith.constant 0 : index
    %c0_37 = arith.constant 0 : index
    %49 = vector.load %arg13[%c0_36, %c0_37] : memref<1x32xf32, #tpu.memory_space<vmem>>, vector<1x32xf32>
    %50 = vector.broadcast %49 : vector<1x32xf32> to vector<16x32xf32>
    %51 = arith.addf %48, %50 : vector<16x32xf32>
    %52 = vector.shape_cast %51 : vector<16x32xf32> to vector<2x8x32xf32>
    %c0_38 = arith.constant 0 : index
    %c0_39 = arith.constant 0 : index
    %c0_40 = arith.constant 0 : index
    %53 = vector.load %arg19[%c0_38, %c0_39, %c0_40] : memref<2x8x32xf32, #tpu.memory_space<vmem>>, vector<2x8x32xf32>
    tpu.vector_store %arg19[%c0_38, %c0_39, %c0_40], %52 {strides = array<i32>} : memref<2x8x32xf32, #tpu.memory_space<vmem>>, vector<2x8x32xf32>,
    %c0_41 = arith.constant 0 : index
    %c0_42 = arith.constant 0 : index
    %54 = vector.load %arg14[%c0_41, %c0_42] : memref<32x16xf32, #tpu.memory_space<vmem>>, vector<32x16xf32>
    %cst_43 = arith.constant dense<0.000000e+00> : vector<16x16xf32>
    %55 = tpu.matmul %51, %54, %cst_43 {dimension_numbers = #tpu.dot_dimension_numbers<[1], [0], [0], [1], [0, 0, 1, 1], [], []>} : vector<16x32xf32>, vector<32x16xf32>, vector<16x16xf32> -> vector<16x16xf32>
    %c0_44 = arith.constant 0 : index
    %c0_45 = arith.constant 0 : index
    %56 = vector.load %arg15[%c0_44, %c0_45] : memref<1x16xf32, #tpu.memory_space<vmem>>, vector<1x16xf32>
    %57 = vector.broadcast %56 : vector<1x16xf32> to vector<16x16xf32>
    %58 = arith.addf %55, %57 : vector<16x16xf32>
    %59 = vector.shape_cast %58 : vector<16x16xf32> to vector<2x8x16xf32>
    %cst_46 = arith.constant dense<0xFF800000> : vector<8x16xf32>
    %60 = vector.multi_reduction <maximumf>, %59, %cst_46 [0] : vector<2x8x16xf32> to vector<8x16xf32>
    %61 = vector.shape_cast %60 : vector<8x16xf32> to vector<1x8x16xf32>
    %62 = vector.broadcast %61 : vector<1x8x16xf32> to vector<2x8x16xf32>
    %63 = arith.subf %59, %62 : vector<2x8x16xf32>
    %64 = math.exp %63 : vector<2x8x16xf32>
    %cst_47 = arith.constant dense<0.000000e+00> : vector<8x16xf32>
    %65 = vector.multi_reduction <add>, %64, %cst_47 [0] : vector<2x8x16xf32> to vector<8x16xf32>
    %66 = vector.shape_cast %65 : vector<8x16xf32> to vector<1x8x16xf32>
    %67 = vector.broadcast %66 : vector<1x8x16xf32> to vector<2x8x16xf32>
    %68 = arith.divf %64, %67 : vector<2x8x16xf32>
    %c0_48 = arith.constant 0 : index
    %c0_49 = arith.constant 0 : index
    %c0_50 = arith.constant 0 : index
    %69 = vector.load %arg17[%c0_48, %c0_49, %c0_50] : memref<2x8x16xf32, #tpu.memory_space<vmem>>, vector<2x8x16xf32>
    tpu.vector_store %arg17[%c0_48, %c0_49, %c0_50], %68 {strides = array<i32>} : memref<2x8x16xf32, #tpu.memory_space<vmem>>, vector<2x8x16xf32>,
    %c0_51 = arith.constant 0 : index
    %c0_52 = arith.constant 0 : index
    %70 = vector.load %arg16[%c0_51, %c0_52] : memref<1x32xf32, #tpu.memory_space<vmem>>, vector<1x32xf32>
    %71 = vector.broadcast %70 : vector<1x32xf32> to vector<16x32xf32>
    %72 = arith.mulf %51, %71 : vector<16x32xf32>
    %73 = vector.shape_cast %72 : vector<16x32xf32> to vector<2x8x32xf32>
    "tpu.trace_start"() <{level = 10 : i32, message = "bnd,bmd->bnm"}> : () -> ()
    %cst_53 = arith.constant dense<0.000000e+00> : vector<2x8x8xf32>
    %74 = tpu.matmul %73, %73, %cst_53 {dimension_numbers = #tpu.dot_dimension_numbers<[2], [2], [1], [1], [0, 0, 0, 1, 1, 1], [0], [0]>} : vector<2x8x32xf32>, vector<2x8x32xf32>, vector<2x8x8xf32> -> vector<2x8x8xf32>
    "tpu.trace_stop"() : () -> ()
    %75 = arith.negf %74 : vector<2x8x8xf32>
    %76 = math.exp %75 : vector<2x8x8xf32>
    %cst_54 = arith.constant 1.000000e+00 : f32
    %77 = vector.broadcast %cst_54 : f32 to vector<2x8x8xf32>
    %78 = arith.addf %77, %76 : vector<2x8x8xf32>
    %79 = arith.divf %77, %78 : vector<2x8x8xf32>
    %c0_55 = arith.constant 0 : index
    %c0_56 = arith.constant 0 : index
    %c0_57 = arith.constant 0 : index
    %80 = vector.load %arg18[%c0_55, %c0_56, %c0_57] : memref<2x8x8xf32, #tpu.memory_space<vmem>>, vector<2x8x8xf32>
    tpu.vector_store %arg18[%c0_55, %c0_56, %c0_57], %79 {strides = array<i32>} : memref<2x8x8xf32, #tpu.memory_space<vmem>>, vector<2x8x8xf32>,
    return
  }
  func.func @transform_0(%arg0: i32) -> i32 {
    %c0_i32 = arith.constant 0 : i32
    %c0_i32_0 = arith.constant 0 : i32
    return %c0_i32 : i32
  }
  func.func @transform_1(%arg0: i32) -> (i32, i32, i32) {
    %c0_i32 = arith.constant 0 : i32
    %c0_i32_0 = arith.constant 0 : i32
    %c0_i32_1 = arith.constant 0 : i32
    %c0_i32_2 = arith.constant 0 : i32
    return %c0_i32, %c0_i32_0, %c0_i32_1 : i32, i32, i32
  }
  func.func @transform_2(%arg0: i32) -> (i32, i32, i32) {
    %c0_i32 = arith.constant 0 : i32
    %c0_i32_0 = arith.constant 0 : i32
    %c0_i32_1 = arith.constant 0 : i32
    %c0_i32_2 = arith.constant 0 : i32
    return %c0_i32, %c0_i32_0, %c0_i32_1 : i32, i32, i32
  }
  func.func @transform_3(%arg0: i32) -> (i32, i32) {
    %c0_i32 = arith.constant 0 : i32
    %c0_i32_0 = arith.constant 0 : i32
    %c0_i32_1 = arith.constant 0 : i32
    return %c0_i32, %c0_i32_0 : i32, i32
  }
  func.func @transform_4(%arg0: i32) -> (i32, i32) {
    %c0_i32 = arith.constant 0 : i32
    %c0_i32_0 = arith.constant 0 : i32
    %c0_i32_1 = arith.constant 0 : i32
    return %c0_i32, %c0_i32_0 : i32, i32
  }
  func.func @transform_5(%arg0: i32) -> (i32, i32) {
    %c0_i32 = arith.constant 0 : i32
    %c0_i32_0 = arith.constant 0 : i32
    %c0_i32_1 = arith.constant 0 : i32
    return %c0_i32, %c0_i32_0 : i32, i32
  }
  func.func @transform_6(%arg0: i32) -> (i32, i32) {
    %c0_i32 = arith.constant 0 : i32
    %c0_i32_0 = arith.constant 0 : i32
    %c0_i32_1 = arith.constant 0 : i32
    return %c0_i32, %c0_i32_0 : i32, i32
  }
  func.func @transform_7(%arg0: i32) -> (i32, i32) {
    %c0_i32 = arith.constant 0 : i32
    %c0_i32_0 = arith.constant 0 : i32
    %c0_i32_1 = arith.constant 0 : i32
    return %c0_i32, %c0_i32_0 : i32, i32
  }
  func.func @transform_8(%arg0: i32) -> (i32, i32) {
    %c0_i32 = arith.constant 0 : i32
    %c0_i32_0 = arith.constant 0 : i32
    %c0_i32_1 = arith.constant 0 : i32
    return %c0_i32, %c0_i32_0 : i32, i32
  }
  func.func @transform_9(%arg0: i32) -> (i32, i32) {
    %c0_i32 = arith.constant 0 : i32
    %c0_i32_0 = arith.constant 0 : i32
    %c0_i32_1 = arith.constant 0 : i32
    return %c0_i32, %c0_i32_0 : i32, i32
  }
  func.func @transform_10(%arg0: i32) -> (i32, i32) {
    %c0_i32 = arith.constant 0 : i32
    %c0_i32_0 = arith.constant 0 : i32
    %c0_i32_1 = arith.constant 0 : i32
    return %c0_i32, %c0_i32_0 : i32, i32
  }
  func.func @transform_11(%arg0: i32) -> (i32, i32) {
    %c0_i32 = arith.constant 0 : i32
    %c0_i32_0 = arith.constant 0 : i32
    %c0_i32_1 = arith.constant 0 : i32
    return %c0_i32, %c0_i32_0 : i32, i32
  }
  func.func @transform_12(%arg0: i32) -> (i32, i32) {
    %c0_i32 = arith.constant 0 : i32
    %c0_i32_0 = arith.constant 0 : i32
    %c0_i32_1 = arith.constant 0 : i32
    return %c0_i32, %c0_i32_0 : i32, i32
  }
  func.func @transform_13(%arg0: i32) -> (i32, i32) {
    %c0_i32 = arith.constant 0 : i32
    %c0_i32_0 = arith.constant 0 : i32
    %c0_i32_1 = arith.constant 0 : i32
    return %c0_i32, %c0_i32_0 : i32, i32
  }
  func.func @transform_14(%arg0: i32) -> (i32, i32) {
    %c0_i32 = arith.constant 0 : i32
    %c0_i32_0 = arith.constant 0 : i32
    %c0_i32_1 = arith.constant 0 : i32
    return %c0_i32, %c0_i32_0 : i32, i32
  }
  func.func @transform_15(%arg0: i32) -> (i32, i32) {
    %c0_i32 = arith.constant 0 : i32
    %c0_i32_0 = arith.constant 0 : i32
    %c0_i32_1 = arith.constant 0 : i32
    return %c0_i32, %c0_i32_0 : i32, i32
  }
  func.func @transform_16(%arg0: i32) -> (i32, i32, i32) {
    %c0_i32 = arith.constant 0 : i32
    %c0_i32_0 = arith.constant 0 : i32
    %c0_i32_1 = arith.constant 0 : i32
    %c0_i32_2 = arith.constant 0 : i32
    return %c0_i32, %c0_i32_0, %c0_i32_1 : i32, i32, i32
  }
  func.func @transform_17(%arg0: i32) -> (i32, i32, i32) {
    %c0_i32 = arith.constant 0 : i32
    %c0_i32_0 = arith.constant 0 : i32
    %c0_i32_1 = arith.constant 0 : i32
    %c0_i32_2 = arith.constant 0 : i32
    return %c0_i32, %c0_i32_0, %c0_i32_1 : i32, i32, i32
  }
  func.func @transform_18(%arg0: i32) -> (i32, i32, i32) {
    %c0_i32 = arith.constant 0 : i32
    %c0_i32_0 = arith.constant 0 : i32
    %c0_i32_1 = arith.constant 0 : i32
    %c0_i32_2 = arith.constant 0 : i32
    return %c0_i32, %c0_i32_0, %c0_i32_1 : i32, i32, i32
  }
}

</mosaic_0001>

<bundles_post_ra>
// kernel: gnn_forward.1
= control target key start
LH: loop header
LB: loop body
LE: loop exit
PB: predicated region body
PF: predicated region fallthrough
CT: control target
= control target key end

     0   :  { %s2032_s0 = inlined_call_operand.hbm [shape: f32[2], index: 0, kind: input, shape index: {}]   ;;  %s2033_s1 = inlined_call_operand.hbm [shape: f32[2,8,8], index: 1, kind: input, shape index: {}]   ;;  %s2034_s2 = inlined_call_operand.hbm [shape: f32[2,8,16], index: 2, kind: input, shape index: {}]   ;;  %s2035_s3 = inlined_call_operand.hbm [shape: f32[16,32], index: 3, kind: input, shape index: {}]   ;;  %s2036_s4 = inlined_call_operand.hbm [shape: f32[1,32], index: 4, kind: input, shape index: {}]   ;;  %s2037_s5 = inlined_call_operand.vmem [shape: f32[32,32], index: 5, kind: input, shape index: {}]   ;;  %s2038_s6 = inlined_call_operand.hbm [shape: f32[1,32], index: 6, kind: input, shape index: {}]   ;;  %s2039_s7 = inlined_call_operand.vmem [shape: f32[32,32], index: 7, kind: input, shape index: {}]   ;;  %s2040_s8 = inlined_call_operand.vmem [shape: f32[1,32], index: 8, kind: input, shape index: {}]   ;;  %s2041_s9 = inlined_call_operand.hbm [shape: f32[32,32], index: 9, kind: input, shape index: {}]   ;;  %s2042_s10 = inlined_call_operand.vmem [shape: f32[1,32], index: 10, kind: input, shape index: {}]   ;;  %s2043_s11 = inlined_call_operand.hbm [shape: f32[32,32], index: 11, kind: input, shape index: {}]   ;;  %s2044_s12 = inlined_call_operand.hbm [shape: f32[1,32], index: 12, kind: input, shape index: {}]   ;;  %s2045_s13 = inlined_call_operand.vmem [shape: f32[32,16], index: 13, kind: input, shape index: {}]   ;;  %s2046_s14 = inlined_call_operand.hbm [shape: f32[1,16], index: 14, kind: input, shape index: {}]   ;;  %s2047_s15 = inlined_call_operand.hbm [shape: f32[1,32], index: 15, kind: input, shape index: {}]   ;;  %s2048_s16 = inlined_call_operand.hbm [shape: f32[2,8,16], index: 16, kind: output, shape index: {0}]   ;;  %s2049_s17 = inlined_call_operand.hbm [shape: f32[2,8,8], index: 17, kind: output, shape index: {1}]   ;;  %s2050_s18 = inlined_call_operand.vmem [shape: f32[2,8,32], index: 18, kind: output, shape index: {2}]  }
   0x1   :  { %2051 = sst [smem:[#allocation33_spill]] %s2032_s0 }
   0x2   :  { %2052 = sst [smem:[#allocation34_spill]] %s2033_s1 }
   0x3   :  { %2053 = sst [smem:[#allocation35_spill]] %s2034_s2 }
   0x4   :  { %24 = vsyncpa [#allocation5], 0 }
   0x5   :  { %25 = vsyncpa [#allocation3], 0 }
   0x6   :  { %26 = vsyncpa [#allocation8], 0 }
   0x7   :  { %27 = vsyncpa [#allocation11], 0 }
   0x8   :  { %28 = vsyncpa [#allocation14], 0 }
   0x9   :  { %29 = vsyncpa [#allocation17], 0 }
   0xa   :  { %30 = vsyncpa [#allocation20], 0 }
   0xb   :  { %31 = vsyncpa [#allocation4], 0 }
   0xc   :  { %32 = vsyncpa [#allocation23], 0  ;;  %s1756_s27 = smov [#allocation7]   ;;  %s1757_s29 = smov [#allocation10]  }
   0xd   :  { %s58_s28 = sshll.u32 %s1756_s27, 4  ;;  %s83_s30 = sshll.u32 %s1757_s29, 4  ;;  %s59_s28 = int_to_ptr.vmem [resolvable:$true] %s58_s28  ;;  %s84_s30 = int_to_ptr.vmem [resolvable:$true] %s83_s30 }
   0xe   :  { %s1498_s0 = scalar_lea.vmem %s59_s28, 256  ;;  %p1503_p1 = scmp.lt.s32.totalorder %s59_s28, %s59_s28 }
   0xf   :  { %p1499_p0 = scmp.ne.s32.totalorder %s59_s28, %s1498_s0  ;;  %p1504_p2 = scmp.lt.s32.totalorder %s1498_s0, %s1498_s0 }
  0x11   :  { %p1505_p3 = por %p1504_p2, %p1503_p1 }
  0x13   :  { %p1506_p4 = pnand %p1505_p3, %p1499_p0 }
  0x15   :  { %1509 = shalt.err (!%p1506_p4)
}
  0x16   :  { %s1758_s19 = smov 128   ;;  %s1759_s1 = smov 8  }
  0x17   :  { %s2054_s22 = sld [smem:[#allocation35_spill]]  ;;  %s1518_s2 = scalar_lea.vmem %s84_s30, 16 }
  0x18   :  { %p1519_p5 = scmp.ne.s32.totalorder %s84_s30, %s1518_s2  ;;  %s1522_s23 = scalar_lea.vmem %s84_s30, 32 }
  0x19   :  { %p1523_p6 = scmp.lt.s32.totalorder %s84_s30, %s84_s30  ;;  %p1524_p7 = scmp.lt.s32.totalorder %s1522_s23, %s1518_s2 }
  0x1b   :  { %p1525_p8 = por %p1524_p7, %p1523_p6 }
  0x1d   :  { %64 = dma.hbm_to_vmem [thread:$0]  %s2054_s22, 256, %s59_s28, [#allocation8], %s1758_s19, %s1758_s19, %s1759_s1  }
  0x1e   :  { %p1526_p9 = pnand %p1525_p8, %p1519_p5 }
  0x20   :  { %1529 = shalt.err (!%p1526_p9)
}
  0x21   :  { %86 = dma.hbm_to_vmem [thread:$0]  %s2036_s4, 16, %s84_s30, [#allocation11]  }
  0x22   :  { %s1760_s26 = smov [#allocation13]   ;;  %s1761_s29 = smov [#allocation16]  }
  0x23   :  { %s108_s27 = sshll.u32 %s1760_s26, 4  ;;  %s135_s0 = sshll.u32 %s1761_s29, 4  ;;  %s109_s27 = int_to_ptr.vmem [resolvable:$true] %s108_s27  ;;  %s136_s0 = int_to_ptr.vmem [resolvable:$true] %s135_s0 }
  0x24   :  { %s1538_s20 = scalar_lea.vmem %s109_s27, 512  ;;  %p1543_p11 = scmp.lt.s32.totalorder %s109_s27, %s109_s27 }
  0x25   :  { %p1539_p10 = scmp.ne.s32.totalorder %s109_s27, %s1538_s20  ;;  %p1544_p12 = scmp.lt.s32.totalorder %s1538_s20, %s1538_s20 }
  0x27   :  { %p1545_p13 = por %p1544_p12, %p1543_p11 }
  0x29   :  { %p1546_p0 = pnand %p1545_p13, %p1539_p10 }
  0x2b   :  { %1549 = shalt.err (!%p1546_p0)
}
  0x2c   :  { %114 = dma.hbm_to_vmem [thread:$0]  %s2041_s9, 512, %s109_s27, [#allocation14], %s1758_s19, %s1758_s19, %s1759_s1  }
  0x2d   :  { %s1558_s4 = scalar_lea.vmem %s136_s0, 16  ;;  %s1562_s30 = scalar_lea.vmem %s136_s0, 32 }
  0x2e   :  { %p1559_p1 = scmp.ne.s32.totalorder %s136_s0, %s1558_s4  ;;  %p1563_p2 = scmp.lt.s32.totalorder %s136_s0, %s136_s0 }
  0x2f   :  { %p1564_p3 = scmp.lt.s32.totalorder %s1562_s30, %s1558_s4 }
  0x31   :  { %p1565_p4 = por %p1564_p3, %p1563_p2 }
  0x33   :  { %p1566_p5 = pnand %p1565_p4, %p1559_p1 }
  0x35   :  { %1569 = shalt.err (!%p1566_p5)
}
  0x36   :  { %138 = dma.hbm_to_vmem [thread:$0]  %s2044_s12, 16, %s136_s0, [#allocation17]  }
  0x37   :  { %s1762_s23 = smov [#allocation2]   ;;  %s2055_s26 = sld [smem:[#allocation33_spill]] }
  0x38   :  { %s1763_s29 = smov [#allocation6]   ;;  %s1764_s9 = smov [#allocation9]  }
  0x39   :  { %s46_s20 = sshll.u32 %s1763_s29, 4  ;;  %s70_s27 = sshll.u32 %s1764_s9, 4  ;;  %s47_s20 = int_to_ptr.vmem [resolvable:$true] %s46_s20  ;;  %s71_s27 = int_to_ptr.vmem [resolvable:$true] %s70_s27 }
  0x3a   :  { %s1586_s28 = scalar_lea.vmem %s47_s20, 256  ;;  %p1591_p7 = scmp.lt.s32.totalorder %s47_s20, %s47_s20 }
  0x3b   :  { %p1587_p6 = scmp.ne.s32.totalorder %s47_s20, %s1586_s28  ;;  %p1592_p8 = scmp.lt.s32.totalorder %s1586_s28, %s1586_s28 }
  0x3d   :  { %40 = dma.hbm_to_smem %s2055_s26, 16, %s1762_s23, [#allocation5]  }
  0x3e   :  { %p1593_p9 = por %p1592_p8, %p1591_p7 }
  0x40   :  { %p1594_p10 = pnand %p1593_p9, %p1587_p6 }
  0x42   :  { %1597 = shalt.err (!%p1594_p10)
}
  0x43   :  { %s2056_s21 = sld [smem:[#allocation34_spill]]  ;;  %s1606_s4 = scalar_lea.vmem %s71_s27, 256 }
  0x44   :  { %p1607_p11 = scmp.ne.s32.totalorder %s71_s27, %s1606_s4  ;;  %p1611_p12 = scmp.lt.s32.totalorder %s71_s27, %s71_s27 }
  0x45   :  { %p1612_p13 = scmp.lt.s32.totalorder %s1606_s4, %s1606_s4 }
  0x47   :  { %p1613_p0 = por %p1612_p13, %p1611_p12 }
  0x49   :  { %52 = dma.hbm_to_vmem [thread:$0]  %s2056_s21, 256, %s47_s20, [#allocation3], %s1758_s19, %s1758_s19, %s1759_s1  }
  0x4a   :  { %p1614_p1 = pnand %p1613_p0, %p1607_p11 }
  0x4c   :  { %1617 = shalt.err (!%p1614_p1)
}
  0x4d   :  { %76 = dma.hbm_to_vmem [thread:$0]  %s2035_s3, 256, %s71_s27, [#allocation8], %s1758_s19, %s1758_s19, %s1759_s1  }
  0x4e   :  { %s1765_s2 = smov [#allocation12]   ;;  %s1766_s24 = smov [#allocation15]  }
  0x4f   :  { %s95_s23 = sshll.u32 %s1765_s2, 4  ;;  %s122_s25 = sshll.u32 %s1766_s24, 4  ;;  %s96_s23 = int_to_ptr.vmem [resolvable:$true] %s95_s23  ;;  %s123_s25 = int_to_ptr.vmem [resolvable:$true] %s122_s25 }
  0x50   :  { %s1626_s26 = scalar_lea.vmem %s96_s23, 16  ;;  %s1630_s29 = scalar_lea.vmem %s96_s23, 32 }
  0x51   :  { %p1627_p2 = scmp.ne.s32.totalorder %s96_s23, %s1626_s26  ;;  %p1631_p3 = scmp.lt.s32.totalorder %s96_s23, %s96_s23 }
  0x52   :  { %p1632_p4 = scmp.lt.s32.totalorder %s1630_s29, %s1626_s26 }
  0x54   :  { %p1633_p5 = por %p1632_p4, %p1631_p3 }
  0x56   :  { %p1634_p6 = pnand %p1633_p5, %p1627_p2 }
  0x58   :  { %1637 = shalt.err (!%p1634_p6)
}
  0x59   :  { %98 = dma.hbm_to_vmem [thread:$0]  %s2038_s6, 16, %s96_s23, [#allocation11]  }
  0x5a   :  { %s1646_s28 = scalar_lea.vmem %s123_s25, 512  ;;  %p1651_p8 = scmp.lt.s32.totalorder %s123_s25, %s123_s25 }
  0x5b   :  { %p1647_p7 = scmp.ne.s32.totalorder %s123_s25, %s1646_s28  ;;  %p1652_p9 = scmp.lt.s32.totalorder %s1646_s28, %s1646_s28 }
  0x5d   :  { %p1653_p10 = por %p1652_p9, %p1651_p8 }
  0x5f   :  { %p1654_p11 = pnand %p1653_p10, %p1647_p7 }
  0x61   :  { %1657 = shalt.err (!%p1654_p11)
}
  0x62   :  { %128 = dma.hbm_to_vmem [thread:$0]  %s2043_s11, 512, %s123_s25, [#allocation14], %s1758_s19, %s1758_s19, %s1759_s1  }
  0x63   :  { %s1767_s12 = smov [#allocation18]   ;;  %s1768_s21 = smov [#allocation19]  }
  0x64   :  { %s147_s0 = sshll.u32 %s1767_s12, 4  ;;  %s157_s6 = sshll.u32 %s1768_s21, 4  ;;  %s148_s0 = int_to_ptr.vmem [resolvable:$true] %s147_s0  ;;  %s158_s6 = int_to_ptr.vmem [resolvable:$true] %s157_s6 }
  0x65   :  { %s1666_s4 = scalar_lea.vmem %s148_s0, 16  ;;  %s1670_s30 = scalar_lea.vmem %s148_s0, 32 }
  0x66   :  { %p1667_p12 = scmp.ne.s32.totalorder %s148_s0, %s1666_s4  ;;  %p1671_p13 = scmp.lt.s32.totalorder %s148_s0, %s148_s0 }
  0x67   :  { %p1672_p0 = scmp.lt.s32.totalorder %s1670_s30, %s1666_s4 }
  0x69   :  { %p1673_p1 = por %p1672_p0, %p1671_p13 }
  0x6b   :  { %p1674_p2 = pnand %p1673_p1, %p1667_p12 }
  0x6d   :  { %1677 = shalt.err (!%p1674_p2)
}
  0x6e   :  { %150 = dma.hbm_to_vmem [thread:$0]  %s2046_s14, 16, %s148_s0, [#allocation17]  }
  0x6f   :  { %s1686_s23 = scalar_lea.vmem %s158_s6, 16  ;;  %s1690_s11 = scalar_lea.vmem %s158_s6, 32 }
  0x70   :  { %p1687_p3 = scmp.ne.s32.totalorder %s158_s6, %s1686_s23  ;;  %p1691_p4 = scmp.lt.s32.totalorder %s158_s6, %s158_s6 }
  0x71   :  { %p1692_p5 = scmp.lt.s32.totalorder %s1690_s11, %s1686_s23 }
  0x73   :  { %p1693_p6 = por %p1692_p5, %p1691_p4 }
  0x75   :  { %p1694_p7 = pnand %p1693_p6, %p1687_p3 }
  0x77   :  { %1697 = shalt.err (!%p1694_p7)
}
  0x78   :  { %160 = dma.hbm_to_vmem [thread:$0]  %s2047_s15, 16, %s158_s6, [#allocation20]  }
  0x79   :  { %1738 = dma.done.wait [#allocation5], 16  }
  0x7a   :  { %1739 = vsyncadd [#allocation5], 4294967280 }
  0x7b   :  { %1740 = dma.done.wait [#allocation3], 256  }
  0x7c   :  { %1741 = vsyncadd [#allocation3], 4294967040 }
  0x7d   :  { %1742 = dma.done.wait [#allocation8], 512  }
  0x7e   :  { %1743 = vsyncadd [#allocation8], 4294966784 }
  0x7f   :  { %1744 = dma.done.wait [#allocation11], 32  }
  0x80   :  { %1745 = vsyncadd [#allocation11], 4294967264 }
  0x81   :  { %1746 = dma.done.wait [#allocation14], 1024  }
  0x82   :  { %1747 = vsyncadd [#allocation14], 4294966272 }
  0x83   :  { %1748 = dma.done.wait [#allocation17], 32  }
  0x84   :  { %1749 = vsyncadd [#allocation17], 4294967264 }
  0x85   :  { %1750 = dma.done.wait [#allocation20], 16  }
  0x86   :  { %1751 = vsyncadd [#allocation20], 4294967280 }
  0x87   :  { %194 = sfence }
  0x88   :  { %v197_v0 = vld [vmem:[#allocation7] sm:$0xff]  ;;  %v198_v1 = vld [vmem:[#allocation7 + $0x8] sm:$0xff]  ;;  %v1769_v2 = vmov 0.0   ;;  %v1918_v3 = vld [vmem:[#allocation6] sm:$0xff]  ;;  %vm199_vm0 = vcmask 64512   ;;  %vm1770_vm1 = vmmov 0  }
  0x89   :  { %1367 = vmatprep.subr.mxu0 %v1769_v2  ;;  %1372 = vmatprep.subr.mxu1 %v1769_v2  ;;  %v1920_v4 = vld [vmem:[#allocation6 + $0x8] sm:$0xff]  ;;  %v353_v6 = vld [vmem:[#allocation9] sm:$0xff]  ;;  %s346_s14 = sld [smem:[#allocation2]]  ;;  %vm362_vm2 = vcmask 130048   ;;  %v449_v16 = vld [vmem:[%s2037_s5 + $0x18] sm:$0xff]  ;;  %vm457_vm3 = vcmask 261120  }
  0x8a   :  { %1368 = vmatpush3.msra.mxu0 %v197_v0  ;;  %1369 = vmatprep.mubr.msk.f32.mxu0 %vm1770_vm1, %v1769_v2  ;;  %v354_v5 = vld [vmem:[#allocation9 + $0x8] sm:$0xff]  ;;  %v448_v17 = vld [vmem:[%s2037_s5 + $0x10] sm:$0xff]  ;;  %v446_v19 = vld [vmem:[%s2037_s5] sm:$0xff]  ;;  %s1301_s23 = sld [smem:[#allocation2 + $0x1]] }
  0x8b   :  { %1373 = vmatpush3.msra.mxu1 %v198_v1  ;;  %1374 = vmatprep.mubr.msk.f32.mxu1 %vm1770_vm1, %v1769_v2  ;;  %v447_v18 = vld [vmem:[%s2037_s5 + $0x8] sm:$0xff]  ;;  %v1293_v20 = vld [vmem:[#allocation10] ss:$0 sm:$0xff]  ;;  %v691_v27 = vld [vmem:[%s2039_s7 + $0x18] sm:$0xff] }
  0x8c   :  { %1370 = vmatmul.mubr.msk.f32.vlgmr.msra.gmra.mxu0 %vm199_vm0, %v1918_v3  ;;  %1375 = vmatmul.mubr.msk.f32.vlgmr.msra.gmra.mxu1 %vm199_vm0, %v1920_v4  ;;  %v1296_v29 = vld [vmem:[#allocation12] ss:$0 sm:$0xff]  ;;  %v689_v36 = vld [vmem:[%s2039_s7 + $0x8] sm:$0xff]  ;;  %v688_v37 = vld [vmem:[%s2039_s7] sm:$0xff] }
  0x8d   :  { %1377 = vmatprep.subr.mxu0 %v354_v5  ;;  %1384 = vmatprep.subr.mxu1 %v449_v16  ;;  %v690_v35 = vld [vmem:[%s2039_s7 + $0x10] sm:$0xff]  ;;  %v784_v48 = vld [vmem:[#allocation13 + $0x10] sm:$0xff]  ;;  %v783_v49 = vld [vmem:[#allocation13 + $0x8] sm:$0xff] }
  0x8e   :  { %1378 = vmatpush3.msra.mxu0 %v354_v5  ;;  %1385 = vmatpush3.msra.mxu1 %v449_v16  ;;  %v785_v47 = vld [vmem:[#allocation13 + $0x18] sm:$0xff]  ;;  %v782_v50 = vld [vmem:[#allocation13] sm:$0xff]  ;;  %v1302_v51 = vld [vmem:[%s2040_s8] ss:$0 sm:$0xff] }
  0x8f   :  { %1379 = vmatprep.subr.mxu0 %v353_v6  ;;  %s347_s15 = sadd.f32 1.0, %s346_s14  ;;  %1386 = vmatprep.subr.mxu1 %v448_v17  ;;  %v879_v58 = vld [vmem:[#allocation15 + $0x18] sm:$0xff]  ;;  %v878_v59 = vld [vmem:[#allocation15 + $0x10] sm:$0xff]  ;;  %v877_v60 = vld [vmem:[#allocation15 + $0x8] sm:$0xff] }
  0x90   :  { %1380 = vmatpush3.msra.mxu0 %v353_v6  ;;  %1387 = vmatpush3.msra.mxu1 %v448_v17  ;;  %s682_s11 = sadd.f32 1.0, %s1301_s23  ;;  %v876_v61 = vld [vmem:[#allocation15] sm:$0xff] }
  0x91   :  { %1395 = vmatprep.subr.mxu0 %v1769_v2  ;;  %v348_v7 = vstv %s347_s15  ;;  %1388 = vmatprep.subr.mxu1 %v447_v18  ;;  %v973_v62 = vld [vmem:[%s2045_s13 + $0x18] sm:$0xff]  ;;  %v972_v63 = vld [vmem:[%s2045_s13 + $0x10] sm:$0xff] }
  0x92   :  { %v349_v8 = vmul.f32 %v348_v7, %v197_v0  ;;  %v350_v9 = vmul.f32 %v348_v7, %v198_v1  ;;  %1389 = vmatpush3.msra.mxu1 %v447_v18  ;;  %v683_v38 = vstv %s682_s11  ;;  %v1305_v0 = vld [vmem:[%s2042_s10] ss:$0 sm:$0xff]  ;;  %v1311_v18 = vld [vmem:[#allocation18] ss:$0 sm:$0xff] }
  0x93   :  { %1390 = vmatprep.subr.mxu1 %v446_v19 }
  0x94   :  { %1391 = vmatpush3.msra.mxu1 %v446_v19 }
  0x95   :  { %1405 = vmatprep.subr.mxu1 %v691_v27 }
 0x14c   :  { %v269_v10 = vpop.f32.mrf.mxu0  ;;  %v342_v11 = vpop.f32.mrf.mxu1 }
 0x14d   :  { %v351_v12 = vadd.f32 %v349_v8, %v269_v10  ;;  %v352_v13 = vadd.f32 %v350_v9, %v342_v11  ;;  %v971_v8 = vld [vmem:[%s2045_s13 + $0x8] sm:$0xff]  ;;  %v970_v9 = vld [vmem:[%s2045_s13] sm:$0xff]  ;;  %v1308_v10 = vld [vmem:[#allocation16] ss:$0 sm:$0xff]  ;;  %s1771_s13 = smov [#allocation22]  }
 0x14e   :  { %v1371_v14 = vpop.f32.mrf.mxu0  ;;  %v1376_v15 = vpop.f32.mrf.mxu1 }
 0x14f   :  { %1381 = vmatprep.mubr.msk.f32.mxu0 %vm362_vm2, %v351_v12  ;;  %v1314_v12 = vld [vmem:[#allocation19] ss:$0 sm:$0xff] }
 0x150   :  { %1382 = vmatmul.mubr.msk.f32.vlgmr.msra.gmra.mxu0 %vm362_vm2, %v352_v13 }
 0x151   :  { %1397 = vmatprep.mubr.msk.f32.mxu0 %vm1770_vm1, %v1769_v2 }
 0x210   :  { %v1383_v21 = vpop.f32.mrf.mxu0 }
 0x211   :  { %v441_v22 = vadd.f32 %v1383_v21, %v1293_v20 }
 0x212   :  { %v435_v23 = vpop.f32.mrf.mxu0 }
 0x213   :  { %v436_v24 = vadd.f32 %v1293_v20, %v435_v23  ;;  %v445_v26 = vmax.f32 %v441_v22, 0.0 }
 0x215   :  { %v444_v25 = vmax.f32 %v436_v24, 0.0 }
 0x217   :  { %1392 = vmatprep.mubr.msk.f32.mxu1 %vm457_vm3, %v444_v25 }
 0x218   :  { %1393 = vmatmul.mubr.msk.f32.vlgmr.msra.gmra.mxu1 %vm457_vm3, %v445_v26 }
 0x219   :  { %1406 = vmatpush3.msra.mxu1 %v691_v27 }
 0x21a   :  { %1407 = vmatprep.subr.mxu1 %v690_v35 }
 0x21b   :  { %1408 = vmatpush3.msra.mxu1 %v690_v35 }
 0x21c   :  { %1409 = vmatprep.subr.mxu1 %v689_v36 }
 0x21d   :  { %1410 = vmatpush3.msra.mxu1 %v689_v36 }
 0x21e   :  { %1411 = vmatprep.subr.mxu1 %v688_v37 }
 0x21f   :  { %1412 = vmatpush3.msra.mxu1 %v688_v37 }
 0x220   :  { %1427 = vmatprep.subr.mxu1 %v879_v58 }
 0x2d8   :  { %v1394_v28 = vpop.f32.mrf.mxu1 }
 0x2d9   :  { %v536_v31 = vadd.f32 %v1394_v28, %v1296_v29 }
 0x2da   :  { %v530_v30 = vpop.f32.mrf.mxu1 }
 0x2db   :  { %v531_v32 = vadd.f32 %v1296_v29, %v530_v30  ;;  %v540_v34 = vmax.f32 %v536_v31, 0.0 }
 0x2dd   :  { %v539_v33 = vmax.f32 %v531_v32, 0.0  ;;  %v685_v43 = vmul.f32 %v683_v38, %v540_v34 }
 0x2df   :  { %1396 = vmatpush3.msra.mxu0 %v539_v33  ;;  %v684_v39 = vmul.f32 %v683_v38, %v539_v33 }
 0x2e0   :  { %1398 = vmatmul.mubr.msk.f32.vlgmr.msra.gmra.mxu0 %vm199_vm0, %v1918_v3  ;;  %1400 = vmatprep.subr.mxu0 %v1769_v2 }
 0x2e1   :  { %1401 = vmatpush3.msra.mxu0 %v540_v34  ;;  %1402 = vmatprep.mubr.msk.f32.mxu0 %vm1770_vm1, %v1769_v2 }
 0x2e2   :  { %1416 = vmatprep.subr.mxu0 %v785_v47 }
 0x2e4   :  { %1403 = vmatmul.mubr.msk.f32.vlgmr.msra.gmra.mxu0 %vm199_vm0, %v1920_v4 }
 0x2e5   :  { %1417 = vmatpush3.msra.mxu0 %v785_v47 }
 0x2e6   :  { %1418 = vmatprep.subr.mxu0 %v784_v48 }
 0x2e7   :  { %1419 = vmatpush3.msra.mxu0 %v784_v48 }
 0x2e8   :  { %1420 = vmatprep.subr.mxu0 %v783_v49 }
 0x2e9   :  { %1421 = vmatpush3.msra.mxu0 %v783_v49 }
 0x2ea   :  { %1422 = vmatprep.subr.mxu0 %v782_v50 }
 0x2eb   :  { %1423 = vmatpush3.msra.mxu0 %v782_v50 }
 0x2ec   :  { %1438 = vmatprep.subr.mxu0 %v973_v62 }
 0x3a0   :  { %v607_v40 = vpop.f32.mrf.mxu0 }
 0x3a1   :  { %v686_v41 = vadd.f32 %v684_v39, %v607_v40 }
 0x3a2   :  { %v1399_v42 = vpop.f32.mrf.mxu0 }
 0x3a3   :  { %1413 = vmatprep.mubr.msk.f32.mxu1 %vm457_vm3, %v686_v41 }
 0x3a4   :  { %v677_v44 = vpop.f32.mrf.mxu0 }
 0x3a5   :  { %v687_v45 = vadd.f32 %v685_v43, %v677_v44 }
 0x3a6   :  { %v1404_v46 = vpop.f32.mrf.mxu0 }
 0x3a7   :  { %1414 = vmatmul.mubr.msk.f32.vlgmr.msra.gmra.mxu1 %vm457_vm3, %v687_v45 }
 0x3a8   :  { %1428 = vmatpush3.msra.mxu1 %v879_v58 }
 0x3a9   :  { %1429 = vmatprep.subr.mxu1 %v878_v59 }
 0x3aa   :  { %1430 = vmatpush3.msra.mxu1 %v878_v59 }
 0x3ab   :  { %1431 = vmatprep.subr.mxu1 %v877_v60 }
 0x3ac   :  { %1432 = vmatpush3.msra.mxu1 %v877_v60 }
 0x3ad   :  { %1433 = vmatprep.subr.mxu1 %v876_v61 }
 0x3ae   :  { %1434 = vmatpush3.msra.mxu1 %v876_v61 }
 0x3af   :  { %1449 = vmatprep.subr.mxu1 %v1769_v2 }
 0x467   :  { %v1415_v52 = vpop.f32.mrf.mxu1 }
 0x468   :  { %v777_v53 = vadd.f32 %v1415_v52, %v1302_v51 }
 0x469   :  { %v771_v54 = vpop.f32.mrf.mxu1 }
 0x46a   :  { %v772_v55 = vadd.f32 %v1302_v51, %v771_v54  ;;  %v781_v57 = vmax.f32 %v777_v53, 0.0 }
 0x46c   :  { %v780_v56 = vmax.f32 %v772_v55, 0.0 }
 0x46e   :  { %1424 = vmatprep.mubr.msk.f32.mxu0 %vm457_vm3, %v780_v56 }
 0x46f   :  { %1425 = vmatmul.mubr.msk.f32.vlgmr.msra.gmra.mxu0 %vm457_vm3, %v781_v57 }
 0x470   :  { %1439 = vmatpush3.msra.mxu0 %v973_v62 }
 0x471   :  { %1440 = vmatprep.subr.mxu0 %v972_v63 }
 0x472   :  { %1441 = vmatpush3.msra.mxu0 %v972_v63 }
 0x473   :  { %1442 = vmatprep.subr.mxu0 %v971_v8 }
 0x474   :  { %1443 = vmatpush3.msra.mxu0 %v971_v8 }
 0x475   :  { %1444 = vmatprep.subr.mxu0 %v970_v9 }
 0x476   :  { %1445 = vmatpush3.msra.mxu0 %v970_v9 }
 0x477   :  { %1454 = vmatprep.subr.mxu0 %v1769_v2 }
 0x52f   :  { %v1426_v1 = vpop.f32.mrf.mxu0 }
 0x530   :  { %v871_v3 = vadd.f32 %v1426_v1, %v1305_v0 }
 0x531   :  { %v865_v4 = vpop.f32.mrf.mxu0 }
 0x532   :  { %v866_v5 = vadd.f32 %v1305_v0, %v865_v4  ;;  %v875_v7 = vmax.f32 %v871_v3, 0.0 }
 0x534   :  { %v874_v6 = vmax.f32 %v866_v5, 0.0 }
 0x536   :  { %1435 = vmatprep.mubr.msk.f32.mxu1 %vm457_vm3, %v874_v6 }
 0x537   :  { %1436 = vmatmul.mubr.msk.f32.vlgmr.msra.gmra.mxu1 %vm457_vm3, %v875_v7 }
 0x538   :  { %1451 = vmatprep.mubr.msk.f32.mxu1 %vm1770_vm1, %v1769_v2 }
 0x5f7   :  { %v1437_v11 = vpop.f32.mrf.mxu1 }
 0x5f8   :  { %v965_v13 = vadd.f32 %v1437_v11, %v1308_v10 }
 0x5f9   :  { %v959_v14 = vpop.f32.mrf.mxu1 }
 0x5fa   :  { %969 = vst.msk [vmem:[%s2050_s18 + $0x8] sm:$0xff] %vm457_vm3, %v965_v13  ;;  %v1087_v15 = vmul.f32 %v1314_v12, %v965_v13  ;;  %v960_v16 = vadd.f32 %v1308_v10, %v959_v14 }
 0x5fc   :  { %968 = vst.msk [vmem:[%s2050_s18] sm:$0xff] %vm457_vm3, %v960_v16  ;;  %v1086_v17 = vmul.f32 %v1314_v12, %v960_v16  ;;  %1446 = vmatprep.mubr.msk.f32.mxu0 %vm457_vm3, %v960_v16  ;;  %s1265_s18 = sshll.u32 %s1771_s13, 4  ;;  %s1266_s18 = int_to_ptr.vmem [resolvable:$true] %s1265_s18 }
 0x5fd   :  { %1447 = vmatmul.mubr.msk.f32.vlgmr.msra.gmra.mxu0 %vm457_vm3, %v965_v13  ;;  %s1698_s21 = scalar_lea.vmem %s1266_s18, 256  ;;  %p1703_p9 = scmp.lt.s32.totalorder %s1266_s18, %s1266_s18 }
 0x5fe   :  { %1455 = vmatpush3.xpose.msk.msra.mxu0 %vm457_vm3, %v1087_v15  ;;  %1450 = vmatpush3.xpose.msk.msra.mxu1 %vm457_vm3, %v1086_v17  ;;  %p1699_p8 = scmp.ne.s32.totalorder %s1266_s18, %s1698_s21  ;;  %p1704_p10 = scmp.lt.s32.totalorder %s1698_s21, %s1698_s21 }
 0x5ff   :  { %1456 = vmatprep.mubr.msk.f32.mxu0 %vm1770_vm1, %v1769_v2 }
 0x600   :  { %p1705_p11 = por %p1704_p10, %p1703_p9 }
 0x601   :  { %1452 = vmatmul.mubr.msk.f32.vlgmr.msra.gmra.mxu1 %vm457_vm3, %v1086_v17  ;;  %1457 = vmatmul.mubr.msk.f32.vlgmr.msra.gmra.mxu0 %vm457_vm3, %v1087_v15 }
 0x602   :  { %p1706_p12 = pnand %p1705_p11, %p1699_p8 }
 0x6bd   :  { %v1448_v19 = vpop.f32.mrf.mxu0 }
 0x6be   :  { %v1059_v20 = vadd.f32 %v1448_v19, %v1311_v18 }
 0x6bf   :  { %v1053_v21 = vpop.f32.mrf.mxu0 }
 0x6c0   :  { %v1054_v22 = vadd.f32 %v1311_v18, %v1053_v21  ;;  %v1063_v25 = vsel %vm362_vm2, %v1059_v20, -inf }
 0x6c1   :  { %v1157_v23 = vpop.f32.mrf.mxu1  ;;  %v1230_v24 = vpop.f32.mrf.mxu0 }
 0x6c2   :  { %v1062_v26 = vsel %vm362_vm2, %v1054_v22, -inf  ;;  %v1319_v27 = vmul.f32 -1.442695, %v1157_v23  ;;  %v1320_v28 = vmul.f32 -1.442695, %v1230_v24 }
 0x6c3   :  { %v1064_v29 = vmax.f32 %v1062_v26, %v1063_v25  ;;  %v1453_v30 = vpop.f32.mrf.mxu1  ;;  %v1458_v2 = vpop.f32.mrf.mxu0 }
 0x6c4   :  { %1476 = vpow2.f32 %v1319_v27 }
 0x6c5   :  { %v1065_v31 = vsub.f32 %v1054_v22, %v1064_v29  ;;  %v1066_v32 = vsub.f32 %v1059_v20, %v1064_v29  ;;  %1478 = vpow2.f32 %v1320_v28 }
 0x6c7   :  { %v1067_v33 = vmul.f32 1.442695, %v1065_v31  ;;  %v1069_v34 = vmul.f32 1.442695, %v1066_v32 }
 0x6c9   :  { %1480 = vpow2.f32 %v1067_v33 }
 0x6ca   :  { %1482 = vpow2.f32 %v1069_v34 }
 0x6d1   :  { %v1477_v35 = vpop.eup %1476 }
 0x6d2   :  { %v1479_v36 = vpop.eup %1478  ;;  %v1240_v37 = vadd.f32 1.0, %v1477_v35 }
 0x6d3   :  { %v1241_v38 = vadd.f32 1.0, %v1479_v36 }
 0x6d4   :  { %1484 = vrcp.f32 %v1240_v37 }
 0x6d5   :  { %1486 = vrcp.f32 %v1241_v38 }
 0x6d6   :  { %v1481_v39 = vpop.eup %1480 }
 0x6d7   :  { %v1483_v40 = vpop.eup %1482  ;;  %v1071_v41 = vsel %vm362_vm2, %v1481_v39, 0.0 }
 0x6d8   :  { %v1072_v42 = vsel %vm362_vm2, %v1483_v40, 0.0 }
 0x6d9   :  { %v1073_v43 = vadd.f32 %v1072_v42, %v1071_v41 }
 0x6db   :  { %1488 = vrcp.f32 %v1073_v43 }
 0x6e1   :  { %v1485_v44 = vpop.eup %1484 }
 0x6e2   :  { %v1487_v45 = vpop.eup %1486  ;;  %1246 = vst.msk [vmem:[#allocation22] sm:$0xff] %vm199_vm0, %v1485_v44 }
 0x6e3   :  { %1247 = vst.msk [vmem:[#allocation22 + $0x8] sm:$0xff] %vm199_vm0, %v1487_v45 }
 0x6e4   :  { %1709 = shalt.err (!%p1706_p12)
}
 0x6e5   :  { %1271 = dma.vmem_to_hbm [thread:$0]  %s1266_s18, 256, %s2049_s17, [#allocation23], %s1758_s19, %s1758_s19, %s1759_s1  }
 0x6e6   :  { %s1772_s4 = smov [#allocation21]  }
 0x6e7   :  { %s1253_s30 = sshll.u32 %s1772_s4, 4  ;;  %s1254_s30 = int_to_ptr.vmem [resolvable:$true] %s1253_s30 }
 0x6e8   :  { %v1489_v46 = vpop.eup %1488  ;;  %s1718_s22 = scalar_lea.vmem %s1254_s30, 256  ;;  %p1723_p0 = scmp.lt.s32.totalorder %s1254_s30, %s1254_s30 }
 0x6e9   :  { %v1075_v47 = vmul.f32 %v1489_v46, %v1481_v39  ;;  %v1076_v48 = vmul.f32 %v1489_v46, %v1483_v40  ;;  %p1719_p13 = scmp.ne.s32.totalorder %s1254_s30, %s1718_s22  ;;  %p1724_p1 = scmp.lt.s32.totalorder %s1718_s22, %s1718_s22 }
 0x6eb   :  { %1077 = vst.msk [vmem:[#allocation21] sm:$0xff] %vm362_vm2, %v1075_v47  ;;  %1078 = vst.msk [vmem:[#allocation21 + $0x8] sm:$0xff] %vm362_vm2, %v1076_v48  ;;  %p1725_p2 = por %p1724_p1, %p1723_p0 }
 0x6ed   :  { %p1726_p3 = pnand %p1725_p2, %p1719_p13 }
 0x6ef   :  { %1729 = shalt.err (!%p1726_p3)
}
 0x6f0   :  { %1259 = dma.vmem_to_hbm [thread:$0]  %s1254_s30, 256, %s2048_s16, [#allocation4], %s1758_s19, %s1758_s19, %s1759_s1  }
 0x6f1   :  { %1752 = dma.done.wait [#allocation4], 256  }
 0x6f2   :  { %1753 = vsyncadd [#allocation4], 4294967040 }
 0x6f3   :  { %1754 = dma.done.wait [#allocation23], 256  }
 0x6f4   :  { %1755 = vsyncadd [#allocation23], 4294967040 }
 0x6f5   :  { %1282 = vsyncpa [#allocation3], 1 }
 0x6f6   :  { %1283 = vsyncpa [#allocation8], 1 }
 0x6f7   :  { %1284 = vsyncpa [#allocation11], 1 }
 0x6f8   :  { %1285 = vsyncpa [#allocation14], 1 }
 0x6f9   :  { %1286 = vsyncpa [#allocation17], 1 }
 0x6fa   :  { %1287 = vsyncpa [#allocation20], 1 }
 0x6fb   :  { %1288 = vsyncpa [#allocation4], 1 }
 0x6fc   :  { %1289 = vsyncpa [#allocation23], 1 }
 0x6fd   :  { %1290 = vsyncpa [#allocation5], 1 }

</bundles_post_ra>
